<compile_context>
chip_gen: v6e
topology: v6e:2x2x1
jax: 0.10.0
libtpu: 0.0.40
codegen_flags: <defaults>
</compile_context>

<pallas_src>
import functools

import jax
import jax.numpy as jnp
from jax.experimental import pallas as pl
from jax.experimental.pallas import tpu as pltpu


_LANE_COLS = 1024        # lane-dense width: multiple of 128 (8 f32 vregs / row)
_MAX_TILE_ROWS = 512     # 512 x 1024 f32 = 2 MiB / tile; fits all generations


def _linear_scaling_kernel(x_ref, o_ref, *, scale):
    # Hot path: elementwise multiply by a compile-time scalar, all in VMEM.
    o_ref[...] = x_ref[...] * jnp.asarray(scale, dtype=x_ref.dtype)


def _round_up(n, m):
    return ((n + m - 1) // m) * m


def linear_scaling(x, scale=8 ** (-0.5)):
    """Apply s(x) = scale * x via a tiled Pallas TPU kernel (shape preserving)."""
    orig_shape = x.shape
    orig_dtype = x.dtype

    # Match PyTorch promotion: integer tensor * python float -> float32.
    if not jnp.issubdtype(orig_dtype, jnp.floating):
        x = x.astype(jnp.float32)
        orig_dtype = jnp.float32

    n = x.size
    if n == 0:
        return x

    itemsize = jnp.dtype(orig_dtype).itemsize
    # Sublane alignment per dtype packing: f32 -> 8, bf16 -> 16, int8/fp8 -> 32.
    sublane_align = max(8, 32 // max(itemsize, 1))

    # Flatten to a lane-dense 2-D slab, independent of the NCHW layout.
    flat = x.reshape(-1)
    cols = _LANE_COLS if n >= _LANE_COLS else 128
    rows = pl.cdiv(n, cols)

    # Row tile: aligned, capped so double-buffered in+out stays well under the
    # scoped VMEM limit on every generation (incl. v7x's 64 MiB physical VMEM).
    tile_rows = min(_MAX_TILE_ROWS, _round_up(rows, sublane_align))

    # Pad so the grid divides evenly -> no partial blocks, no masked ld/st.
    rows_padded = _round_up(rows, tile_rows)
    n_padded = rows_padded * cols
    if n_padded != n:
        flat = jnp.pad(flat, (0, n_padded - n))
    x2d = flat.reshape(rows_padded, cols)

    grid = (rows_padded // tile_rows,)
    kernel = functools.partial(_linear_scaling_kernel, scale=scale)

    cost = pl.CostEstimate(
        flops=n_padded,
        transcendentals=0,
        bytes_accessed=2 * n_padded * itemsize,
    )

    out2d = pl.pallas_call(
        kernel,
        out_shape=jax.ShapeDtypeStruct((rows_padded, cols), orig_dtype),
        grid=grid,
        in_specs=[pl.BlockSpec((tile_rows, cols), lambda i: (i, 0))],
        out_specs=pl.BlockSpec((tile_rows, cols), lambda i: (i, 0)),
        compiler_params=pltpu.CompilerParams(
            dimension_semantics=("parallel",),
        ),
        cost_estimate=cost,
    )(x2d)

    out_flat = out2d.reshape(-1)
    if n_padded != n:
        out_flat = out_flat[:n]
    return out_flat.reshape(orig_shape)


if __name__ == "__main__":
    key = jax.random.PRNGKey(0)
    scale = 8 ** (-0.5)

    # Small NCHW input consistent with typical conv-style usage.
    x = jax.random.normal(key, (2, 4, 16, 16), dtype=jnp.float32)
    out = jax.block_until_ready(linear_scaling(x, scale=scale))
    expected = x * scale
    assert out.shape == x.shape
    assert out.dtype == x.dtype
    assert jnp.allclose(out, expected, atol=1e-6, rtol=1e-6)

    # Odd-sized input to exercise the padding / slicing path.
    key2 = jax.random.PRNGKey(1)
    y = jax.random.normal(key2, (3, 5, 7, 11), dtype=jnp.float32)
    out_y = jax.block_until_ready(linear_scaling(y, scale=scale))
    assert out_y.shape == y.shape
    assert jnp.allclose(out_y, y * scale, atol=1e-6, rtol=1e-6)

    print("KERNEL_OK")
</pallas_src>

<mosaic_0001>
module attributes {stable_mosaic.version = 11 : i64} {
  func.func @_linear_scaling_kernel(%arg0: i32, %arg1: memref<8x1024xf32, #tpu.memory_space<vmem>>, %arg2: memref<8x1024xf32, #tpu.memory_space<vmem>>) attributes {dimension_semantics = [#tpu.dimension_semantics<parallel>], iteration_bounds = array<i64: 1>, scalar_prefetch = 0 : i64, scratch_operands = 0 : i64, tpu.core_type = #tpu.core_type<tc>, window_params = [{transform_indices = @transform_0, window_bounds = array<i64: 8, 1024>}, {transform_indices = @transform_1, window_bounds = array<i64: 8, 1024>}]} {
    %c0 = arith.constant 0 : index
    %c0_0 = arith.constant 0 : index
    %0 = vector.load %arg1[%c0, %c0_0] : memref<8x1024xf32, #tpu.memory_space<vmem>>, vector<8x1024xf32>
    %cst = arith.constant 0.353553385 : f32
    %1 = vector.broadcast %cst : f32 to vector<8x1024xf32>
    %2 = arith.mulf %0, %1 : vector<8x1024xf32>
    %c0_1 = arith.constant 0 : index
    %c0_2 = arith.constant 0 : index
    %3 = vector.load %arg2[%c0_1, %c0_2] : memref<8x1024xf32, #tpu.memory_space<vmem>>, vector<8x1024xf32>
    tpu.vector_store %arg2[%c0_1, %c0_2], %2 {strides = array<i32>} : memref<8x1024xf32, #tpu.memory_space<vmem>>, vector<8x1024xf32>,
    return
  }
  func.func @transform_0(%arg0: i32) -> (i32, i32) {
    %c0_i32 = arith.constant 0 : i32
    %c0_i32_0 = arith.constant 0 : i32
    return %arg0, %c0_i32 : i32, i32
  }
  func.func @transform_1(%arg0: i32) -> (i32, i32) {
    %c0_i32 = arith.constant 0 : i32
    %c0_i32_0 = arith.constant 0 : i32
    return %arg0, %c0_i32 : i32, i32
  }
}

</mosaic_0001>

<bundles_post_ra>
// kernel: tpu_custom_call.1
= control target key start
LH: loop header
LB: loop body
LE: loop exit
PB: predicated region body
PF: predicated region fallthrough
CT: control target
= control target key end

     0   :  { %6 = vsyncpa [#allocation3], 0  ;;  %s124_s0 = inlined_call_operand.hbm [shape: f32[8,1024], index: 0, kind: input, shape index: {}]   ;;  %s125_s1 = inlined_call_operand.hbm [shape: f32[8,1024], index: 1, kind: output, shape index: {}]  }
   0x1   :  { %7 = vsyncpa [#allocation4], 0  ;;  %s106_s6 = smov [#allocation2]  }
   0x2   :  { %s14_s7 = sshll.u32 %s106_s6, 4  ;;  %s15_s7 = int_to_ptr.vmem [resolvable:$true] %s14_s7 }
   0x3   :  { %s70_s8 = scalar_lea.vmem %s15_s7, 1024  ;;  %p75_p1 = scmp.lt.s32.totalorder %s15_s7, %s15_s7 }
   0x4   :  { %p71_p0 = scmp.ne.s32.totalorder %s15_s7, %s70_s8  ;;  %p76_p2 = scmp.lt.s32.totalorder %s70_s8, %s70_s8 }
   0x6   :  { %p77_p3 = por %p76_p2, %p75_p1 }
   0x8   :  { %p78_p4 = pnand %p77_p3, %p71_p0 }
   0xa   :  { %81 = shalt.err (!%p78_p4)
}
   0xb   :  { %17 = dma.hbm_to_vmem [thread:$0]  %s124_s0, 1024, %s15_s7, [#allocation3]  }
   0xc   :  { %102 = dma.done.wait [#allocation3], 1024  }
   0xd   :  { %103 = vsyncadd [#allocation3], 4294966272  ;;  %v21_v0 = vld [vmem:[#allocation2] sm:$0xff]  ;;  %v22_v1 = vld [vmem:[#allocation2 + $0x8] sm:$0xff]  ;;  %s107_s11 = smov [#allocation5]  }
   0xe   :  { %v23_v2 = vld [vmem:[#allocation2 + $0x10] sm:$0xff]  ;;  %v29_v3 = vmul.f32 0.35355338, %v21_v0  ;;  %v30_v4 = vmul.f32 0.35355338, %v22_v1  ;;  %v24_v6 = vld [vmem:[#allocation2 + $0x18] sm:$0xff] }
   0xf   :  { %v31_v5 = vmul.f32 0.35355338, %v23_v2  ;;  %v25_v7 = vld [vmem:[#allocation2 + $0x20] sm:$0xff]  ;;  %v26_v8 = vld [vmem:[#allocation2 + $0x28] sm:$0xff]  ;;  %s51_s12 = sshll.u32 %s107_s11, 4  ;;  %v27_v12 = vld [vmem:[#allocation2 + $0x30] sm:$0xff]  ;;  %s52_s12 = int_to_ptr.vmem [resolvable:$true] %s51_s12 }
  0x10   :  { %37 = vst [vmem:[#allocation5] sm:$0xff] %v29_v3  ;;  %38 = vst [vmem:[#allocation5 + $0x8] sm:$0xff] %v30_v4  ;;  %v32_v9 = vmul.f32 0.35355338, %v24_v6  ;;  %v33_v10 = vmul.f32 0.35355338, %v25_v7  ;;  %p87_p6 = scmp.lt.s32.totalorder %s52_s12, %s52_s12 }
  0x11   :  { %39 = vst [vmem:[#allocation5 + $0x10] sm:$0xff] %v31_v5  ;;  %v34_v11 = vmul.f32 0.35355338, %v26_v8  ;;  %v28_v13 = vld [vmem:[#allocation2 + $0x38] sm:$0xff]  ;;  %v35_v14 = vmul.f32 0.35355338, %v27_v12 }
  0x12   :  { %40 = vst [vmem:[#allocation5 + $0x18] sm:$0xff] %v32_v9  ;;  %41 = vst [vmem:[#allocation5 + $0x20] sm:$0xff] %v33_v10  ;;  %v36_v15 = vmul.f32 0.35355338, %v28_v13  ;;  %s82_s0 = scalar_lea.vmem %s52_s12, 1024 }
  0x13   :  { %42 = vst [vmem:[#allocation5 + $0x28] sm:$0xff] %v34_v11  ;;  %43 = vst [vmem:[#allocation5 + $0x30] sm:$0xff] %v35_v14  ;;  %p83_p5 = scmp.ne.s32.totalorder %s52_s12, %s82_s0  ;;  %p88_p7 = scmp.lt.s32.totalorder %s82_s0, %s82_s0 }
  0x14   :  { %44 = vst [vmem:[#allocation5 + $0x38] sm:$0xff] %v36_v15 }
  0x15   :  { %p89_p8 = por %p88_p7, %p87_p6 }
  0x17   :  { %p90_p9 = pnand %p89_p8, %p83_p5 }
  0x19   :  { %93 = shalt.err (!%p90_p9)
}
  0x1a   :  { %54 = dma.vmem_to_hbm [thread:$0]  %s52_s12, 1024, %s125_s1, [#allocation4]  }
  0x1b   :  { %104 = dma.done.wait [#allocation4], 1024  }
  0x1c   :  { %105 = vsyncadd [#allocation4], 4294966272 }
  0x1d   :  { %58 = vsyncpa [#allocation3], 1 }
  0x1e   :  { %59 = vsyncpa [#allocation4], 1 }

</bundles_post_ra>
